<compile_context>
chip_gen: v6e
topology: v6e:2x2x1
jax: 0.10.0
libtpu: 0.0.40
codegen_flags: <defaults>
</compile_context>

<pallas_src>
import functools
import math

import jax
import jax.numpy as jnp
from jax.experimental import pallas as pl
from jax.experimental.pallas import tpu as pltpu


def _label_smoothing_kernel(x_ref, tgt_ref, out_ref, *,
                            base, confidence, ent_const, padding_idx):
    """One (tile_n, V) row-block of the label-smoothed KL loss.

    Per valid row r:  loss_r = ENT - [ confidence*x[r,tgt] + base*(rowsum - x[r,tgt] - x[r,pad]) ]
    implemented as a single weighted lane-reduce: sum_c w(r,c) * x(r,c).
    """
    s = pl.program_id(1)

    @pl.when(s == 0)
    def _():
        out_ref[...] = jnp.zeros_like(out_ref)

    x = x_ref[...].astype(jnp.float32)        # (tn, V) log-probs (bf16/f32 in HBM)
    tgt = tgt_ref[...]                        # (tn, 1) int32
    tn, V = x.shape

    cols = jax.lax.broadcasted_iota(jnp.int32, (tn, V), 1)

    # Per-column weight of the smoothed target distribution (only 3 possible values).
    w = jnp.where(cols == tgt, jnp.float32(confidence), jnp.float32(base))
    w = jnp.where(cols == padding_idx, jnp.float32(0.0), w)

    cross = jnp.sum(w * x, axis=-1, keepdims=True)                      # (tn, 1)
    row_loss = jnp.where(tgt != padding_idx,
                         jnp.float32(ent_const) - cross,
                         jnp.float32(0.0))                              # (tn, 1)

    # Accumulate per-row partials into the resident output block (VALU add only,
    # no per-step cross-lane reduce, no serialized scalar accumulator).
    out_ref[...] += row_loss[None, :, :]


def label_smoothing_loss(x, target, *, size, padding_idx, smoothing=0.0,
                         x_block_budget_bytes=6 * 1024 * 1024, num_parts=2):
    """Pallas implementation of LabelSmoothing.forward(x, target) -> scalar loss."""
    N, V = x.shape
    assert V == size, "x.shape[1] must equal `size`"

    confidence = 1.0 - smoothing
    base = smoothing / (size - 2)
    # t*log(t) over one valid row is a compile-time constant (0*log0 := 0).
    ent_const = 0.0
    if confidence > 0.0:
        ent_const += confidence * math.log(confidence)
    if base > 0.0:
        ent_const += (size - 2) * base * math.log(base)

    itemsize = jnp.dtype(x.dtype).itemsize
    # Largest row block whose x tile fits the per-buffer VMEM budget (multiple of 8).
    tile_n = max(8, (x_block_budget_bytes // (V * itemsize)) // 8 * 8)
    rows_per_part = ((N + num_parts - 1) // num_parts + 7) // 8 * 8
    tile_n = min(tile_n, rows_per_part)

    chunk = num_parts * tile_n
    n_pad = (N + chunk - 1) // chunk * chunk
    if n_pad != N:
        # Padded rows get target == padding_idx, so they contribute exactly 0.
        x = jnp.pad(x, ((0, n_pad - N), (0, 0)))
        target = jnp.pad(target, (0, n_pad - N), constant_values=padding_idx)
    tgt2d = target.reshape(n_pad, 1).astype(jnp.int32)

    steps = n_pad // chunk

    kernel = functools.partial(
        _label_smoothing_kernel,
        base=float(base),
        confidence=float(confidence),
        ent_const=float(ent_const),
        padding_idx=int(padding_idx),
    )

    partials = pl.pallas_call(
        kernel,
        out_shape=jax.ShapeDtypeStruct((num_parts, tile_n, 1), jnp.float32),
        grid_spec=pltpu.PrefetchScalarGridSpec(
            num_scalar_prefetch=0,
            grid=(num_parts, steps),
            in_specs=[
                pl.BlockSpec((tile_n, V), lambda p, s: (p * steps + s, 0)),
                pl.BlockSpec((tile_n, 1), lambda p, s: (p * steps + s, 0)),
            ],
            out_specs=pl.BlockSpec((1, tile_n, 1), lambda p, s: (p, 0, 0)),
        ),
        compiler_params=pltpu.CompilerParams(
            dimension_semantics=("parallel", "arbitrary"),
            vmem_limit_bytes=32 * 1024 * 1024,
        ),
    )(x, tgt2d)

    # Tiny (num_parts * tile_n) final reduction done by XLA outside the kernel.
    return jnp.sum(partials)


def _reference(x, target, *, size, padding_idx, smoothing):
    """Pure-JAX reference of the PyTorch module for verification."""
    N, V = x.shape
    confidence = 1.0 - smoothing
    cols = jnp.arange(V)[None, :]
    t = jnp.full((N, V), smoothing / (size - 2), dtype=jnp.float32)
    t = jnp.where(cols == target[:, None], confidence, t)
    t = t.at[:, padding_idx].set(0.0)
    t = jnp.where((target == padding_idx)[:, None], 0.0, t)
    term = jnp.where(t > 0, t * jnp.log(jnp.where(t > 0, t, 1.0)), 0.0) - t * x
    return jnp.sum(term)


if __name__ == "__main__":
    key = jax.random.PRNGKey(0)
    N, V = 16, 32                # 16 tokens, vocab size 32
    padding_idx = 0
    smoothing = 0.1

    kx, kt = jax.random.split(key)
    logits = jax.random.normal(kx, (N, V), dtype=jnp.float32)
    x = jax.nn.log_softmax(logits, axis=-1)           # KLDivLoss expects log-probs
    target = jax.random.randint(kt, (N,), 0, V, dtype=jnp.int32)
    target = target.at[3].set(padding_idx)            # include some padding targets
    target = target.at[10].set(padding_idx)

    loss = label_smoothing_loss(
        x, target, size=V, padding_idx=padding_idx, smoothing=smoothing
    )
    loss = jax.block_until_ready(loss)

    ref = _reference(x, target, size=V, padding_idx=padding_idx, smoothing=smoothing)
    assert jnp.allclose(loss, ref, rtol=1e-5, atol=1e-5), (loss, ref)

    print("KERNEL_OK")
</pallas_src>

<mosaic_0001>
module attributes {stable_mosaic.version = 11 : i64} {
  func.func @_label_smoothing_kernel(%arg0: i32, %arg1: i32, %arg2: memref<8x32xf32, #tpu.memory_space<vmem>>, %arg3: memref<8x1xi32, #tpu.memory_space<vmem>>, %arg4: memref<1x8x1xf32, #tpu.memory_space<vmem>>) attributes {dimension_semantics = [#tpu.dimension_semantics<parallel>, #tpu.dimension_semantics<arbitrary>], iteration_bounds = array<i64: 2, 1>, scalar_prefetch = 0 : i64, scratch_operands = 0 : i64, tpu.core_type = #tpu.core_type<tc>, window_params = [{transform_indices = @transform_0, window_bounds = array<i64: 8, 32>}, {transform_indices = @transform_1, window_bounds = array<i64: 8, 1>}, {transform_indices = @transform_2, window_bounds = array<i64: 1, 8, 1>}]} {
    %c0_i32 = arith.constant 0 : i32
    %0 = arith.cmpi eq, %arg1, %c0_i32 : i32
    %1 = arith.extui %0 : i1 to i32
    %c0_i32_0 = arith.constant 0 : i32
    %2 = arith.cmpi ne, %1, %c0_i32_0 : i32
    scf.if %2 {
      %cst_17 = arith.constant 0.000000e+00 : f32
      %28 = vector.broadcast %cst_17 : f32 to vector<1x8x1xf32>
      %c0_18 = arith.constant 0 : index
      %c0_19 = arith.constant 0 : index
      %c0_20 = arith.constant 0 : index
      %29 = vector.load %arg4[%c0_18, %c0_19, %c0_20] : memref<1x8x1xf32, #tpu.memory_space<vmem>>, vector<1x8x1xf32>
      tpu.vector_store %arg4[%c0_18, %c0_19, %c0_20], %28 {strides = array<i32>} : memref<1x8x1xf32, #tpu.memory_space<vmem>>, vector<1x8x1xf32>,
    } else {
    }
    %c0 = arith.constant 0 : index
    %c0_1 = arith.constant 0 : index
    %3 = vector.load %arg2[%c0, %c0_1] : memref<8x32xf32, #tpu.memory_space<vmem>>, vector<8x32xf32>
    %c0_2 = arith.constant 0 : index
    %c0_3 = arith.constant 0 : index
    %4 = vector.load %arg3[%c0_2, %c0_3] : memref<8x1xi32, #tpu.memory_space<vmem>>, vector<8x1xi32>
    %5 = tpu.iota {dimensions = array<i32: 1>} : vector<8x32xi32>
    %6 = vector.broadcast %4 : vector<8x1xi32> to vector<8x32xi32>
    %7 = arith.cmpi eq, %5, %6 : vector<8x32xi32>
    %cst = arith.constant 0.899999976 : f32
    %cst_4 = arith.constant 0.00333333341 : f32
    %8 = vector.broadcast %cst : f32 to vector<8x32xf32>
    %9 = vector.broadcast %cst_4 : f32 to vector<8x32xf32>
    %10 = arith.select %7, %8, %9 : vector<8x32xi1>, vector<8x32xf32>
    %c0_i32_5 = arith.constant 0 : i32
    %11 = vector.broadcast %c0_i32_5 : i32 to vector<8x32xi32>
    %12 = arith.cmpi eq, %5, %11 : vector<8x32xi32>
    %cst_6 = arith.constant 0.000000e+00 : f32
    %13 = vector.broadcast %cst_6 : f32 to vector<8x32xf32>
    %14 = arith.select %12, %13, %10 : vector<8x32xi1>, vector<8x32xf32>
    %15 = arith.mulf %14, %3 : vector<8x32xf32>
    %cst_7 = arith.constant dense<0.000000e+00> : vector<8xf32>
    %16 = vector.multi_reduction <add>, %15, %cst_7 [1] : vector<8x32xf32> to vector<8xf32>
    %17 = vector.shape_cast %16 : vector<8xf32> to vector<8x1xf32>
    %c0_i32_8 = arith.constant 0 : i32
    %18 = vector.broadcast %c0_i32_8 : i32 to vector<8x1xi32>
    %19 = arith.cmpi ne, %4, %18 : vector<8x1xi32>
    %cst_9 = arith.constant -0.665202737 : f32
    %20 = vector.broadcast %cst_9 : f32 to vector<8x1xf32>
    %21 = arith.subf %20, %17 : vector<8x1xf32>
    %cst_10 = arith.constant 0.000000e+00 : f32
    %22 = vector.broadcast %cst_10 : f32 to vector<8x1xf32>
    %23 = arith.select %19, %21, %22 : vector<8x1xi1>, vector<8x1xf32>
    %c0_11 = arith.constant 0 : index
    %c0_12 = arith.constant 0 : index
    %c0_13 = arith.constant 0 : index
    %24 = vector.load %arg4[%c0_11, %c0_12, %c0_13] : memref<1x8x1xf32, #tpu.memory_space<vmem>>, vector<1x8x1xf32>
    %25 = vector.shape_cast %23 : vector<8x1xf32> to vector<1x8x1xf32>
    %26 = arith.addf %24, %25 : vector<1x8x1xf32>
    %c0_14 = arith.constant 0 : index
    %c0_15 = arith.constant 0 : index
    %c0_16 = arith.constant 0 : index
    %27 = vector.load %arg4[%c0_14, %c0_15, %c0_16] : memref<1x8x1xf32, #tpu.memory_space<vmem>>, vector<1x8x1xf32>
    tpu.vector_store %arg4[%c0_14, %c0_15, %c0_16], %26 {strides = array<i32>} : memref<1x8x1xf32, #tpu.memory_space<vmem>>, vector<1x8x1xf32>,
    return
  }
  func.func @transform_0(%arg0: i32, %arg1: i32) -> (i32, i32) {
    %c1_i32 = arith.constant 1 : i32
    %0 = arith.muli %arg0, %c1_i32 : i32
    %1 = arith.addi %0, %arg1 : i32
    %c0_i32 = arith.constant 0 : i32
    %c0_i32_0 = arith.constant 0 : i32
    return %1, %c0_i32 : i32, i32
  }
  func.func @transform_1(%arg0: i32, %arg1: i32) -> (i32, i32) {
    %c1_i32 = arith.constant 1 : i32
    %0 = arith.muli %arg0, %c1_i32 : i32
    %1 = arith.addi %0, %arg1 : i32
    %c0_i32 = arith.constant 0 : i32
    %c0_i32_0 = arith.constant 0 : i32
    return %1, %c0_i32 : i32, i32
  }
  func.func @transform_2(%arg0: i32, %arg1: i32) -> (i32, i32, i32) {
    %c0_i32 = arith.constant 0 : i32
    %c0_i32_0 = arith.constant 0 : i32
    %c0_i32_1 = arith.constant 0 : i32
    return %arg0, %c0_i32, %c0_i32_0 : i32, i32, i32
  }
}

</mosaic_0001>

<bundles_post_ra>
// kernel: tpu_custom_call.1
= control target key start
LH: loop header
LB: loop body
LE: loop exit
PB: predicated region body
PF: predicated region fallthrough
CT: control target
= control target key end

     0   :  { %s364_s9 = smov 0   ;;  %s366_s10 = smov 0   ;;  %s402_s0 = inlined_call_operand.vmem [shape: f32[16,32], index: 0, kind: input, shape index: {}]   ;;  %s403_s1 = inlined_call_operand.vmem [shape: s32[16,1], index: 1, kind: input, shape index: {}]   ;;  %s404_s2 = inlined_call_operand.vmem [shape: f32[2,8,1], index: 2, kind: output, shape index: {}]  }
   0x1   :  { %s368_s11 = smov 0  }
   0x2 LB: > { %s24_s12 = sadd.s32 1, %s340_s10  ;;  %p288_p0 = scmp.ge.s32.totalorder %s344_s11, 1  ;;  %s344_s11 = sphi %s368_s11, %s12_s11   ;;  %s340_s10 = sphi %s366_s10, %s406_s10   ;;  %s336_s9 = sphi %s364_s9, %s405_s9  }
   0x3   : > { %p26_p1 = scmp.ge.s32.totalorder %s24_s12, 2  ;;  %p140_p2 = scmp.lt.s32.totalorder %s344_s11, 3 }
   0x5   : > { %s408_s12 = smov (%p26_p1, %s24_s12), 0  ;;  %p141_p3 = pnand %p288_p0, %p140_p2 }
   0x6   : > { %p167_p4 = scmp.lt.s32.totalorder (!%p141_p3), %s336_s9, 1 }
   0x7   : > { %144 = sbr.rel (%p141_p3) target bundleno = 290 (0x122), region = 28 }
   0xc   : > { %v346_v0 = vmov 0   ;;  %s410_s9 = smov (!%p167_p4, %s336_s9), 1  ;;  %vm186_vm0 = vcmask 7168   ;;  %v347_v1 = vmov 0.0   ;;  %v190_v3 = vlaneseq }
   0xd   : > { %321 = vset.pattern.permute.xlu0 %v346_v0  ;;  %s289_s13 = sshll.u32 %s410_s9, 3  ;;  %v348_v7 = vmov 0.0033333334   ;;  %vm200_vm3 = vcmask 261120  }
   0xe   : > { %s176_s16 = scalar_lea.vmem %s403_s1, %s289_s13  ;;  %s181_s19 = scalar_lea.vmem %s404_s2, %s289_s13  ;;  %v191_v4 = vand.u32 127, %v190_v3 }
   0xf   : > { %187 = vst.msk [vmem:[%s181_s19] sm:$0xff] %vm186_vm0, %v347_v1  ;;  %v189_v2 = vld [vmem:[%s176_s16] sm:$0xff]  ;;  %s170_s22 = scalar_lea.vmem %s402_s0, %s289_s13 }
  0x10   : > { %193 = vperm.xlu0 %321, %v189_v2   ;;  %vm197_vm1 = vcmp.eq.s32.totalorder %v191_v4, 0  ;;  %v188_v6 = vld [vmem:[%s170_s22] sm:$0xff]  ;;  %vm204_vm4 = vcmp.ne.s32.totalorder %v189_v2, 0 }
  0x16   : > { %v207_v13 = vld [vmem:[%s181_s19] sm:$0xff] }
  0x8b   : > { %v194_v5 = vpop.permute.xlu0 %193 }
  0x8c   : > { %vm195_vm2 = vcmp.eq.s32.totalorder %v191_v4, %v194_v5 }
  0x8d   : > { %v196_v8 = vsel %vm195_vm2, 0.9, %v348_v7 }
  0x8e   : > { %v198_v9 = vsel %vm197_vm1, 0.0, %v196_v8 }
  0x8f   : > { %v199_v10 = vmul.f32 %v198_v9, %v188_v6 }
  0x91   : > { %v201_v11 = vsel %vm200_vm3, %v199_v10, 0.0 }
  0x92   : > { %202 = vadd.xlane.f32.xlu0 %v201_v11 }
 0x11b   : > { %v203_v12 = vpop.xlane.xlu0 %202 }
 0x11c   : > { %v205_v14 = vsub.f32 -0.66520274, %v203_v12 }
 0x11e   : > { %v206_v15 = vsel %vm204_vm4, %v205_v14, 0.0 }
 0x11f   : > { %v208_v16 = vadd.f32 %v207_v13, %v206_v15 }
 0x121   : > { %210 = vst.msk [vmem:[%s181_s19] sm:$0xff] %vm186_vm0, %v208_v16 }
 0x122 PF: > { %s12_s11 = sadd.s32 1, %s344_s11   ;;  %s405_s9 = smov %s340_s10 }
 0x123   : > { %p9_p5 = scmp.ge.s32.totalorder %s12_s11, 4   ;;  %s406_s10 = smov %s408_s12 }
 0x125   :  { %11 = sbr.rel (!%p9_p5) target bundleno = 2 (0x2), region = 65 }

</bundles_post_ra>
